<compile_context>
chip_gen: v7x
topology: tpu7x:2x2x1
jax: 0.10.0
libtpu: 0.0.40
codegen_flags: <defaults>
</compile_context>

<pallas_src>
import jax
import jax.numpy as jnp
from jax.experimental import pallas as pl
from jax.experimental.pallas import tpu as pltpu


def _round_up(x, m):
    return ((x + m - 1) // m) * m


# ----------------------------------------------------------------------------
# Fused kernel: one grid step == TB batch rows (rows pre-flattened to TB*Lp).
# ----------------------------------------------------------------------------
def make_fused_kernel(Kmax, TB, Lp, E, co_pad, c_pad):
    M = TB * Lp

    def kernel(x_ref, w_ref, cb_ref, mask_ref, lw_ref, lb_ref, o_ref):
        # x_ref   : (M, E)            bf16  padded & row-flattened embeddings
        # w_ref   : (Kmax, E, co_pad) bf16  per-shift conv weights; branch i in lanes [i*Co,(i+1)*Co)
        # cb_ref  : (1, co_pad)       f32   packed conv biases
        # mask_ref: (Lp, co_pad)      f32   1.0 on valid (position, branch-band) entries
        # lw_ref  : (co_pad, c_pad)   bf16  packed final linear weight
        # lb_ref  : (1, c_pad)        f32
        # o_ref   : (TB, c_pad)       f32
        x = x_ref[...]                                        # (M, E) bf16
        # Aligned 8-row zero tail so every shift-slice below stays in bounds.
        xe = jnp.concatenate([x, jnp.zeros((8, E), x.dtype)], axis=0)

        # All conv branches fused: Kmax shift-matmuls against the shared
        # 128-lane Co slab (disjoint 8-lane band per branch, zero elsewhere).
        acc = jnp.zeros((M, co_pad), jnp.float32)
        for k in range(Kmax):                                 # static unroll
            acc = acc + jnp.dot(xe[k:k + M, :], w_ref[k],
                                preferred_element_type=jnp.float32)
        acc = jnp.maximum(acc + cb_ref[...], 0.0)             # bias + ReLU (f32)

        # Global max-pool per row.  The mask zeroes positions outside each
        # branch's valid conv-output range (safe after ReLU: valid values >= 0,
        # padded lanes are exactly 0).
        acc = acc.reshape(TB, Lp, co_pad) * mask_ref[...][None]
        pooled = jnp.max(acc, axis=1)                         # (TB, co_pad)

        # Single final linear — branch features already sit in disjoint bands,
        # so the PyTorch concat is implicit in the lane layout.
        out = jnp.dot(pooled.astype(jnp.bfloat16), lw_ref[...],
                      preferred_element_type=jnp.float32) + lb_ref[...]
        # Dropout(p=0.3): inference semantics -> identity.
        # TODO(synk): training-mode dropout (random mask + 1/(1-p)) not applied.
        o_ref[...] = out.astype(o_ref.dtype)

    return kernel


# ----------------------------------------------------------------------------
# Parameter prep: pack PyTorch-layout params into the shared 128-lane slab.
# ----------------------------------------------------------------------------
def prepare_kernel_params(params, kernel_sizes, num_kernels, num_categories,
                          co_pad=128, c_pad=128):
    E = params["embedding"].shape[1]
    Co = num_kernels
    Kmax = max(kernel_sizes)

    # Branch i occupies lanes [i*Co, (i+1)*Co); everything else stays zero
    # (required for the band-sum / masked-pool tricks).
    conv_w = jnp.zeros((Kmax, E, co_pad), jnp.float32)
    conv_b = jnp.zeros((1, co_pad), jnp.float32)
    for i, (K, (w, b)) in enumerate(zip(kernel_sizes, params["convs"])):
        conv_w = conv_w.at[:K, :, i * Co:(i + 1) * Co].set(w)     # w: (K, E, Co)
        conv_b = conv_b.at[0, i * Co:(i + 1) * Co].set(b[0])

    feat = len(kernel_sizes) * Co
    lin_w = jnp.zeros((co_pad, c_pad), jnp.float32)
    lin_w = lin_w.at[:feat, :num_categories].set(params["lin_w"])
    lin_b = jnp.zeros((1, c_pad), jnp.float32).at[0, :num_categories].set(
        params["lin_b"][0])

    return {"conv_w": conv_w.astype(jnp.bfloat16), "conv_b": conv_b,
            "lin_w": lin_w.astype(jnp.bfloat16), "lin_b": lin_b}


def build_pool_mask(kernel_sizes, num_kernels, L, Lp, max_pad, co_pad=128):
    mask = jnp.zeros((Lp, co_pad), jnp.float32)
    for i, K in enumerate(kernel_sizes):
        pad = K // 2
        s = max_pad - pad                    # shift of branch K inside the max_pad layout
        L_out = L + 2 * pad - K + 1          # PyTorch conv output length (K=4 -> L+1)
        mask = mask.at[s:s + L_out, i * num_kernels:(i + 1) * num_kernels].set(1.0)
    return mask


# ----------------------------------------------------------------------------
# Forward pass (single fused pallas_call)
# ----------------------------------------------------------------------------
def cnn_forward(token_ids, params, kparams, kernel_sizes, num_kernels,
                num_categories, co_pad=128, c_pad=128, batch_block=None):
    # Embedding lookup (gather) — glue in plain JAX; activations bf16 from here.
    # TODO(synk): fuse the gather into the kernel (scalar-prefetch token ids +
    # HBM-resident table DMA) to remove the extra HBM round-trip at large vocab/L.
    emb = params["embedding"][token_ids].astype(jnp.bfloat16)    # (B, L, E)
    B, L, E = emb.shape

    Kmax = max(kernel_sizes)
    max_pad = max(K // 2 for K in kernel_sizes)
    Lp = _round_up(L + 2 * max_pad, 16)          # sublane-aligned padded row length

    # Batch tile: aim for conv-matmul M = TB*Lp >= 256, TB a multiple of 8
    # (or the whole batch for tiny configs so block dims equal full dims).
    if batch_block is None:
        batch_block = max(8, _round_up(pl.cdiv(256, Lp), 8))
    if B <= 8:
        TB = B
    else:
        TB = min(_round_up(batch_block, 8), _round_up(B, 8))
    B_pad = _round_up(B, TB)
    n_blocks = B_pad // TB

    # Pad once in HBM: [max_pad zeros | L tokens | trailing zeros], then flatten
    # rows so each grid step sees a lane/sublane-aligned (TB*Lp, E) slab.
    xpad = jnp.pad(emb, ((0, B_pad - B), (max_pad, Lp - L - max_pad), (0, 0)))
    xflat = xpad.reshape(B_pad * Lp, E)

    mask = build_pool_mask(kernel_sizes, num_kernels, L, Lp, max_pad, co_pad)
    w, cb = kparams["conv_w"], kparams["conv_b"]
    lw, lb = kparams["lin_w"], kparams["lin_b"]

    out_pad = pl.pallas_call(
        make_fused_kernel(Kmax, TB, Lp, E, co_pad, c_pad),
        out_shape=jax.ShapeDtypeStruct((B_pad, c_pad), jnp.float32),
        grid=(n_blocks,),
        in_specs=[
            pl.BlockSpec((TB * Lp, E), lambda b: (b, 0)),
            pl.BlockSpec(w.shape, lambda b: (0, 0, 0)),
            pl.BlockSpec(cb.shape, lambda b: (0, 0)),
            pl.BlockSpec(mask.shape, lambda b: (0, 0)),
            pl.BlockSpec(lw.shape, lambda b: (0, 0)),
            pl.BlockSpec(lb.shape, lambda b: (0, 0)),
        ],
        out_specs=pl.BlockSpec((TB, c_pad), lambda b: (b, 0)),
        compiler_params=pltpu.CompilerParams(
            dimension_semantics=("parallel",),
            vmem_limit_bytes=32 * 1024 * 1024),     # fits v7x's 64 MiB physical VMEM
    )(xflat, w, cb, mask, lw, lb)

    return out_pad[:B, :num_categories]              # drop padded rows / lanes


# ----------------------------------------------------------------------------
# Pure-JAX reference (f32) for correctness checking
# ----------------------------------------------------------------------------
def cnn_forward_ref(token_ids, params, kernel_sizes):
    emb = params["embedding"][token_ids]
    pooled = []
    for K, (w, b) in zip(kernel_sizes, params["convs"]):
        pad = K // 2
        xp = jnp.pad(emb, ((0, 0), (pad, pad), (0, 0)))
        L_out = xp.shape[1] - K + 1
        acc = sum(jnp.einsum("ble,eo->blo", xp[:, k:k + L_out, :], w[k])
                  for k in range(K))
        acc = jax.nn.relu(acc + b[0][None, None, :])
        pooled.append(jnp.max(acc, axis=1))
    feat = jnp.concatenate(pooled, axis=1)
    return feat @ params["lin_w"] + params["lin_b"][0][None, :]


# ----------------------------------------------------------------------------
# Deterministic parameter init (matches the module's __init__ shapes)
# ----------------------------------------------------------------------------
def init_params(key, vocab_size, emb_size, num_categories, num_kernels, kernel_sizes):
    keys = jax.random.split(key, 3 + 2 * len(kernel_sizes))
    embedding = jax.random.normal(keys[0], (vocab_size, emb_size), jnp.float32)
    embedding = embedding.at[0].set(0.0)                 # padding_idx=0

    convs = []
    for i, K in enumerate(kernel_sizes):
        fan_in = 1 * K * emb_size
        bound = 1.0 / jnp.sqrt(fan_in)
        # stored as (K, E, Co); equivalent to PyTorch Conv2d weight (Co, 1, K, E)
        w = jax.random.uniform(keys[1 + 2 * i], (K, emb_size, num_kernels),
                               jnp.float32, -bound, bound)
        b = jax.random.uniform(keys[2 + 2 * i], (1, num_kernels),
                               jnp.float32, -bound, bound)
        convs.append((w, b))

    feat_dim = len(kernel_sizes) * num_kernels
    bound = 1.0 / jnp.sqrt(feat_dim)
    lin_w = jax.random.uniform(keys[-2], (feat_dim, num_categories),
                               jnp.float32, -bound, bound)
    lin_b = jax.random.uniform(keys[-1], (1, num_categories),
                               jnp.float32, -bound, bound)
    return {"embedding": embedding, "convs": convs,
            "lin_w": lin_w, "lin_b": lin_b}


if __name__ == "__main__":
    # Small, module-consistent config:
    vocab_size = 50          # len(index2word)
    emb_size = 32
    num_categories = 5
    num_kernels = 8          # Co
    kernel_sizes = (3, 4, 5)  # kernels="3,4,5"
    B, L = 2, 16

    key = jax.random.PRNGKey(0)
    k_param, k_data = jax.random.split(key)
    params = init_params(k_param, vocab_size, emb_size, num_categories,
                         num_kernels, kernel_sizes)
    token_ids = jax.random.randint(k_data, (B, L), 0, vocab_size, jnp.int32)

    kparams = prepare_kernel_params(params, kernel_sizes, num_kernels,
                                    num_categories)

    out = cnn_forward(token_ids, params, kparams, kernel_sizes, num_kernels,
                      num_categories)
    out = jax.block_until_ready(out)

    assert out.shape == (B, num_categories), out.shape
    assert bool(jnp.all(jnp.isfinite(out)))

    ref = cnn_forward_ref(token_ids, params, kernel_sizes)
    max_err = float(jnp.max(jnp.abs(out - ref)))
    assert max_err < 5e-2, f"mismatch vs reference: {max_err}"

    print("KERNEL_OK")
</pallas_src>

<mosaic_0001>
module attributes {stable_mosaic.version = 11 : i64} {
  func.func @kernel(%arg0: i32, %arg1: memref<64x32xbf16, #tpu.memory_space<vmem>>, %arg2: memref<5x32x128xbf16, #tpu.memory_space<vmem>>, %arg3: memref<1x128xf32, #tpu.memory_space<vmem>>, %arg4: memref<32x128xf32, #tpu.memory_space<vmem>>, %arg5: memref<128x128xbf16, #tpu.memory_space<vmem>>, %arg6: memref<1x128xf32, #tpu.memory_space<vmem>>, %arg7: memref<2x128xf32, #tpu.memory_space<vmem>>) attributes {dimension_semantics = [#tpu.dimension_semantics<parallel>], iteration_bounds = array<i64: 1>, scalar_prefetch = 0 : i64, scratch_operands = 0 : i64, tpu.core_type = #tpu.core_type<tc>, window_params = [{transform_indices = @transform_0, window_bounds = array<i64: 64, 32>}, {pipeline_mode = #tpu.pipeline_mode<synchronous>, transform_indices = @transform_1, window_bounds = array<i64: 5, 32, 128>}, {pipeline_mode = #tpu.pipeline_mode<synchronous>, transform_indices = @transform_2, window_bounds = array<i64: 1, 128>}, {pipeline_mode = #tpu.pipeline_mode<synchronous>, transform_indices = @transform_3, window_bounds = array<i64: 32, 128>}, {pipeline_mode = #tpu.pipeline_mode<synchronous>, transform_indices = @transform_4, window_bounds = array<i64: 128, 128>}, {pipeline_mode = #tpu.pipeline_mode<synchronous>, transform_indices = @transform_5, window_bounds = array<i64: 1, 128>}, {transform_indices = @transform_6, window_bounds = array<i64: 2, 128>}]} {
    %c0 = arith.constant 0 : index
    %c0_0 = arith.constant 0 : index
    %0 = vector.load %arg1[%c0, %c0_0] : memref<64x32xbf16, #tpu.memory_space<vmem>>, vector<64x32xbf16>
    %cst = arith.constant 0.000000e+00 : bf16
    %1 = vector.broadcast %cst : bf16 to vector<8x32xbf16>
    %2 = tpu.concatenate %0, %1 in 0 : vector<64x32xbf16>, vector<8x32xbf16> -> vector<72x32xbf16>
    %cst_1 = arith.constant 0.000000e+00 : f32
    %3 = vector.broadcast %cst_1 : f32 to vector<64x128xf32>
    %4 = vector.extract_strided_slice %2 {offsets = [0, 0], sizes = [64, 32], strides = [1, 1]} : vector<72x32xbf16> to vector<64x32xbf16>
    %c0_2 = arith.constant 0 : index
    %c0_3 = arith.constant 0 : index
    %c0_4 = arith.constant 0 : index
    %5 = vector.load %arg2[%c0_2, %c0_3, %c0_4] : memref<5x32x128xbf16, #tpu.memory_space<vmem>>, vector<1x32x128xbf16>
    %6 = vector.shape_cast %5 : vector<1x32x128xbf16> to vector<32x128xbf16>
    %cst_5 = arith.constant dense<0.000000e+00> : vector<64x128xf32>
    %7 = tpu.matmul %4, %6, %cst_5 {dimension_numbers = #tpu.dot_dimension_numbers<[1], [0], [0], [1], [0, 0, 1, 1], [], []>} : vector<64x32xbf16>, vector<32x128xbf16>, vector<64x128xf32> -> vector<64x128xf32>
    %8 = arith.addf %3, %7 : vector<64x128xf32>
    %9 = vector.extract_strided_slice %2 {offsets = [1, 0], sizes = [64, 32], strides = [1, 1]} : vector<72x32xbf16> to vector<64x32xbf16>
    %c1 = arith.constant 1 : index
    %c0_6 = arith.constant 0 : index
    %c0_7 = arith.constant 0 : index
    %10 = vector.load %arg2[%c1, %c0_6, %c0_7] : memref<5x32x128xbf16, #tpu.memory_space<vmem>>, vector<1x32x128xbf16>
    %11 = vector.shape_cast %10 : vector<1x32x128xbf16> to vector<32x128xbf16>
    %cst_8 = arith.constant dense<0.000000e+00> : vector<64x128xf32>
    %12 = tpu.matmul %9, %11, %cst_8 {dimension_numbers = #tpu.dot_dimension_numbers<[1], [0], [0], [1], [0, 0, 1, 1], [], []>} : vector<64x32xbf16>, vector<32x128xbf16>, vector<64x128xf32> -> vector<64x128xf32>
    %13 = arith.addf %8, %12 : vector<64x128xf32>
    %14 = vector.extract_strided_slice %2 {offsets = [2, 0], sizes = [64, 32], strides = [1, 1]} : vector<72x32xbf16> to vector<64x32xbf16>
    %c2 = arith.constant 2 : index
    %c0_9 = arith.constant 0 : index
    %c0_10 = arith.constant 0 : index
    %15 = vector.load %arg2[%c2, %c0_9, %c0_10] : memref<5x32x128xbf16, #tpu.memory_space<vmem>>, vector<1x32x128xbf16>
    %16 = vector.shape_cast %15 : vector<1x32x128xbf16> to vector<32x128xbf16>
    %cst_11 = arith.constant dense<0.000000e+00> : vector<64x128xf32>
    %17 = tpu.matmul %14, %16, %cst_11 {dimension_numbers = #tpu.dot_dimension_numbers<[1], [0], [0], [1], [0, 0, 1, 1], [], []>} : vector<64x32xbf16>, vector<32x128xbf16>, vector<64x128xf32> -> vector<64x128xf32>
    %18 = arith.addf %13, %17 : vector<64x128xf32>
    %19 = vector.extract_strided_slice %2 {offsets = [3, 0], sizes = [64, 32], strides = [1, 1]} : vector<72x32xbf16> to vector<64x32xbf16>
    %c3 = arith.constant 3 : index
    %c0_12 = arith.constant 0 : index
    %c0_13 = arith.constant 0 : index
    %20 = vector.load %arg2[%c3, %c0_12, %c0_13] : memref<5x32x128xbf16, #tpu.memory_space<vmem>>, vector<1x32x128xbf16>
    %21 = vector.shape_cast %20 : vector<1x32x128xbf16> to vector<32x128xbf16>
    %cst_14 = arith.constant dense<0.000000e+00> : vector<64x128xf32>
    %22 = tpu.matmul %19, %21, %cst_14 {dimension_numbers = #tpu.dot_dimension_numbers<[1], [0], [0], [1], [0, 0, 1, 1], [], []>} : vector<64x32xbf16>, vector<32x128xbf16>, vector<64x128xf32> -> vector<64x128xf32>
    %23 = arith.addf %18, %22 : vector<64x128xf32>
    %24 = vector.extract_strided_slice %2 {offsets = [4, 0], sizes = [64, 32], strides = [1, 1]} : vector<72x32xbf16> to vector<64x32xbf16>
    %c4 = arith.constant 4 : index
    %c0_15 = arith.constant 0 : index
    %c0_16 = arith.constant 0 : index
    %25 = vector.load %arg2[%c4, %c0_15, %c0_16] : memref<5x32x128xbf16, #tpu.memory_space<vmem>>, vector<1x32x128xbf16>
    %26 = vector.shape_cast %25 : vector<1x32x128xbf16> to vector<32x128xbf16>
    %cst_17 = arith.constant dense<0.000000e+00> : vector<64x128xf32>
    %27 = tpu.matmul %24, %26, %cst_17 {dimension_numbers = #tpu.dot_dimension_numbers<[1], [0], [0], [1], [0, 0, 1, 1], [], []>} : vector<64x32xbf16>, vector<32x128xbf16>, vector<64x128xf32> -> vector<64x128xf32>
    %28 = arith.addf %23, %27 : vector<64x128xf32>
    %c0_18 = arith.constant 0 : index
    %c0_19 = arith.constant 0 : index
    %29 = vector.load %arg3[%c0_18, %c0_19] : memref<1x128xf32, #tpu.memory_space<vmem>>, vector<1x128xf32>
    %30 = vector.broadcast %29 : vector<1x128xf32> to vector<64x128xf32>
    %31 = arith.addf %28, %30 : vector<64x128xf32>
    %cst_20 = arith.constant 0.000000e+00 : f32
    %32 = vector.broadcast %cst_20 : f32 to vector<64x128xf32>
    %33 = arith.maximumf %31, %32 : vector<64x128xf32>
    %34 = vector.shape_cast %33 : vector<64x128xf32> to vector<2x32x128xf32>
    %c0_21 = arith.constant 0 : index
    %c0_22 = arith.constant 0 : index
    %35 = vector.load %arg4[%c0_21, %c0_22] : memref<32x128xf32, #tpu.memory_space<vmem>>, vector<32x128xf32>
    %36 = vector.shape_cast %35 : vector<32x128xf32> to vector<1x32x128xf32>
    %37 = vector.broadcast %36 : vector<1x32x128xf32> to vector<2x32x128xf32>
    %38 = arith.mulf %34, %37 : vector<2x32x128xf32>
    %cst_23 = arith.constant dense<0xFF800000> : vector<2x128xf32>
    %39 = vector.multi_reduction <maximumf>, %38, %cst_23 [1] : vector<2x32x128xf32> to vector<2x128xf32>
    %40 = arith.truncf %39 : vector<2x128xf32> to vector<2x128xbf16>
    %c0_24 = arith.constant 0 : index
    %c0_25 = arith.constant 0 : index
    %41 = vector.load %arg5[%c0_24, %c0_25] : memref<128x128xbf16, #tpu.memory_space<vmem>>, vector<128x128xbf16>
    %cst_26 = arith.constant dense<0.000000e+00> : vector<2x128xf32>
    %42 = tpu.matmul %40, %41, %cst_26 {dimension_numbers = #tpu.dot_dimension_numbers<[1], [0], [0], [1], [0, 0, 1, 1], [], []>} : vector<2x128xbf16>, vector<128x128xbf16>, vector<2x128xf32> -> vector<2x128xf32>
    %c0_27 = arith.constant 0 : index
    %c0_28 = arith.constant 0 : index
    %43 = vector.load %arg6[%c0_27, %c0_28] : memref<1x128xf32, #tpu.memory_space<vmem>>, vector<1x128xf32>
    %44 = vector.broadcast %43 : vector<1x128xf32> to vector<2x128xf32>
    %45 = arith.addf %42, %44 : vector<2x128xf32>
    %c0_29 = arith.constant 0 : index
    %c0_30 = arith.constant 0 : index
    %46 = vector.load %arg7[%c0_29, %c0_30] : memref<2x128xf32, #tpu.memory_space<vmem>>, vector<2x128xf32>
    tpu.vector_store %arg7[%c0_29, %c0_30], %45 {strides = array<i32>} : memref<2x128xf32, #tpu.memory_space<vmem>>, vector<2x128xf32>,
    return
  }
  func.func @transform_0(%arg0: i32) -> (i32, i32) {
    %c0_i32 = arith.constant 0 : i32
    %c0_i32_0 = arith.constant 0 : i32
    return %arg0, %c0_i32 : i32, i32
  }
  func.func @transform_1(%arg0: i32) -> (i32, i32, i32) {
    %c0_i32 = arith.constant 0 : i32
    %c0_i32_0 = arith.constant 0 : i32
    %c0_i32_1 = arith.constant 0 : i32
    %c0_i32_2 = arith.constant 0 : i32
    return %c0_i32, %c0_i32_0, %c0_i32_1 : i32, i32, i32
  }
  func.func @transform_2(%arg0: i32) -> (i32, i32) {
    %c0_i32 = arith.constant 0 : i32
    %c0_i32_0 = arith.constant 0 : i32
    %c0_i32_1 = arith.constant 0 : i32
    return %c0_i32, %c0_i32_0 : i32, i32
  }
  func.func @transform_3(%arg0: i32) -> (i32, i32) {
    %c0_i32 = arith.constant 0 : i32
    %c0_i32_0 = arith.constant 0 : i32
    %c0_i32_1 = arith.constant 0 : i32
    return %c0_i32, %c0_i32_0 : i32, i32
  }
  func.func @transform_4(%arg0: i32) -> (i32, i32) {
    %c0_i32 = arith.constant 0 : i32
    %c0_i32_0 = arith.constant 0 : i32
    %c0_i32_1 = arith.constant 0 : i32
    return %c0_i32, %c0_i32_0 : i32, i32
  }
  func.func @transform_5(%arg0: i32) -> (i32, i32) {
    %c0_i32 = arith.constant 0 : i32
    %c0_i32_0 = arith.constant 0 : i32
    %c0_i32_1 = arith.constant 0 : i32
    return %c0_i32, %c0_i32_0 : i32, i32
  }
  func.func @transform_6(%arg0: i32) -> (i32, i32) {
    %c0_i32 = arith.constant 0 : i32
    %c0_i32_0 = arith.constant 0 : i32
    return %arg0, %c0_i32 : i32, i32
  }
}

</mosaic_0001>

<bundles_post_ra>
// kernel: tpu_custom_call.1
= control target key start
LH: loop header
LB: loop body
LE: loop exit
PB: predicated region body
PF: predicated region fallthrough
CT: control target
= control target key end

     0   :  { %11 = vsyncpa [#allocation3], 0  ;;  %s1313_s0 = inlined_call_operand.vmem [shape: bf16[64,32], index: 0, kind: input, shape index: {}]   ;;  %s1314_s1 = inlined_call_operand.hbm [shape: bf16[5,32,128], index: 1, kind: input, shape index: {}]   ;;  %s1315_s2 = inlined_call_operand.vmem [shape: f32[1,128], index: 2, kind: input, shape index: {}]   ;;  %s1316_s3 = inlined_call_operand.vmem [shape: f32[32,128], index: 3, kind: input, shape index: {}]   ;;  %s1317_s4 = inlined_call_operand.hbm [shape: bf16[128,128], index: 4, kind: input, shape index: {}]   ;;  %s1318_s5 = inlined_call_operand.vmem [shape: f32[1,128], index: 5, kind: input, shape index: {}]   ;;  %s1319_s6 = inlined_call_operand.hbm [shape: f32[2,128], index: 6, kind: output, shape index: {}]  }
   0x1   :  { %12 = vsyncpa [#allocation6], 0 }
   0x2   :  { %13 = vsyncpa [#allocation4], 0  ;;  %s1139_s21 = smov [#allocation2]   ;;  %s1067_s25 = scalar_lea.hbm %s1314_s1, 1280 }
   0x3   :  { %s21_s22 = sshll.u32 %s1139_s21, 4  ;;  %p1068_p0 = scmp.ne.s32.totalorder %s1314_s1, %s1067_s25  ;;  %s22_s22 = int_to_ptr.vmem [resolvable:$true] %s21_s22 }
   0x4   :  { %p1071_p1 = scmp.lt.u32.totalorder %s1067_s25, %s1314_s1 }
   0x6   :  { %p1073_p2 = pnand %p1071_p1, %p1068_p0 }
   0x8   :  { %1076 = shalt.err (!%p1073_p2)
}
   0x9   :  { %s1077_s30 = scalar_lea.vmem %s22_s22, 1280  ;;  %p1082_p4 = scmp.lt.s32.totalorder %s22_s22, %s22_s22 }
   0xa   :  { %p1078_p3 = scmp.ne.s32.totalorder %s22_s22, %s1077_s30  ;;  %p1083_p5 = scmp.lt.s32.totalorder %s1077_s30, %s1077_s30 }
   0xc   :  { %p1084_p6 = por %p1083_p5, %p1082_p4 }
   0xe   :  { %p1085_p7 = pnand %p1084_p6, %p1078_p3 }
  0x10   :  { %1088 = shalt.err (!%p1085_p7)
}
  0x11   :  { %s1140_s7 = smov 64   ;;  %s1141_s8 = smov 4  }
  0x12   :  { %27 = dma.hbm_to_vmem [thread:$0]  %s1314_s1, 1280, %s22_s22, [#allocation3], %s1140_s7, %s1140_s7, %s1141_s8  }
  0x13   :  { %s1142_s11 = smov [#allocation5]   ;;  %s1089_s15 = scalar_lea.hbm %s1317_s4, 1024 }
  0x14   :  { %s37_s12 = sshll.u32 %s1142_s11, 4  ;;  %p1090_p8 = scmp.ne.s32.totalorder %s1317_s4, %s1089_s15  ;;  %s38_s12 = int_to_ptr.vmem [resolvable:$true] %s37_s12 }
  0x15   :  { %p1093_p9 = scmp.lt.u32.totalorder %s1089_s15, %s1317_s4 }
  0x17   :  { %p1095_p10 = pnand %p1093_p9, %p1090_p8 }
  0x19   :  { %1098 = shalt.err (!%p1095_p10)
}
  0x1a   :  { %s1099_s20 = scalar_lea.vmem %s38_s12, 1024  ;;  %p1104_p12 = scmp.lt.s32.totalorder %s38_s12, %s38_s12 }
  0x1b   :  { %p1100_p11 = scmp.ne.s32.totalorder %s38_s12, %s1099_s20  ;;  %p1105_p13 = scmp.lt.s32.totalorder %s1099_s20, %s1099_s20 }
  0x1d   :  { %p1106_p0 = por %p1105_p13, %p1104_p12 }
  0x1f   :  { %p1107_p1 = pnand %p1106_p0, %p1100_p11 }
  0x21   :  { %1110 = shalt.err (!%p1107_p1)
}
  0x22   :  { %43 = dma.hbm_to_vmem [thread:$0]  %s1317_s4, 1024, %s38_s12, [#allocation6], %s1140_s7, %s1140_s7, %s1141_s8  }
  0x23   :  { %1133 = dma.done.wait [#allocation3], 1280  }
  0x24   :  { %1134 = vsyncadd [#allocation3], 4294966016 }
  0x25   :  { %1135 = dma.done.wait [#allocation6], 1024  }
  0x26   :  { %1136 = vsyncadd [#allocation6], 4294966272  ;;  %v1045_v0 = vld [vmem:[#allocation2 + $0x10] sm:$0xff]   ;;  %v1046_v1 = vld [vmem:[#allocation2 + $0x20] sm:$0xff]   ;;  %vm90_vm0 = vsmask.f32 7424 }
  0x27   :  { %925 = vmatprep.subr.bf16.mxu1 %v1045_v0  ;;  %v1047_v2 = vld [vmem:[#allocation2 + $0x18] sm:$0xff]   ;;  %949 = vmatprep.subr.bf16.mxu0 %v1046_v1  ;;  %v1048_v3 = vld [vmem:[#allocation2 + $0x28] sm:$0xff]   ;;  %v1209_v4 = vld [vmem:[%s1313_s0] sm:$0xff]   ;;  %vm139_vm1 = vcmask 261120   ;;  %vm308_vm2 = vcmask 1046528   ;;  %v1143_v20 = vmov 0  }
  0x28   :  { %926 = vmatpush3.bf16.msra.mxu1 %v1045_v0  ;;  %950 = vmatpush3.bf16.msra.mxu0 %v1046_v1  ;;  %v1214_v5 = vld [vmem:[%s1313_s0 + $0x8] sm:$0xff]   ;;  %v1219_v6 = vld [vmem:[%s1313_s0 + $0x10] sm:$0xff]   ;;  %v92_v7 = vshrl.u32 %v1209_v4, 16  ;;  %v94_v8 = vshll.u32 %v1209_v4, 16  ;;  %v309_v11 = vrot.slane %v1209_v4, 1  ;;  %v1232_v19 = vld [vmem:[%s1313_s0 + $0x18] sm:$0xff]  }
  0x29   :  { %927 = vmatprep.subr.bf16.mxu1 %v1047_v2  ;;  %951 = vmatprep.subr.bf16.mxu0 %v1048_v3  ;;  %v99_v9 = vshll.u32 %v1214_v5, 16  ;;  %v103_v10 = vshrl.u32 %v1214_v5, 16  ;;  %v310_v12 = vrot.slane %v1214_v5, 1  ;;  %v107_v13 = vshll.u32 %v1219_v6, 16  ;;  %v1052_v18 = vld [vmem:[#allocation2 + $0x30] sm:$0xff]   ;;  %v1054_v32 = vld [vmem:[#allocation2] sm:$0xff]  }
  0x2a   :  { %v312_v14 = vrot.slane %v1219_v6, 1  ;;  %v96_v15 = vrot.slane %v94_v8, 1  ;;  %v421_v17 = vrot.slane %v92_v7, 1  ;;  %v1234_v21 = vrot.slane %v1143_v20, 1  ;;  %v1055_v33 = vld [vmem:[#allocation2 + $0x38] sm:$0xff]   ;;  %v1056_v39 = vld [vmem:[#allocation2 + $0x8] sm:$0xff]  }
  0x2b   :  { %v101_v16 = vrot.slane %v99_v9, 1  ;;  %v425_v22 = vrot.slane %v99_v9, 2  ;;  %v311_v23 = vsel %vm308_vm2, %v309_v11, %v310_v12  ;;  %v109_v24 = vrot.slane %v107_v13, 1  ;;  %v1057_v43 = vld [vmem:[#allocation2 + $0x40] sm:$0xff]   ;;  %v1058_v59 = vld [vmem:[#allocation2 + $0x48] sm:$0xff]   ;;  %v1063_v11 = vld [vmem:[#allocation5 + $0x20] sm:$0xff]  }
  0x2c   :  { %928 = vmatpush3.bf16.msra.mxu1 %v1047_v2  ;;  %952 = vmatpush3.bf16.msra.mxu0 %v1048_v3  ;;  %v313_v25 = vsel %vm308_vm2, %v310_v12, %v312_v14  ;;  %v97_v26 = vor.u32 %v96_v15, %v92_v7  ;;  %v111_v28 = vshrl.u32 %v1219_v6, 16  ;;  %v115_v29 = vshll.u32 %v1232_v19, 16  ;;  %v1059_v7 = vld [vmem:[#allocation5] sm:$0xff]   ;;  %v1061_v9 = vld [vmem:[#allocation5 + $0x10] sm:$0xff]   ;;  %v1064_v12 = vld [vmem:[#allocation5 + $0x28] sm:$0xff]   ;;  %s1146_s14 = smov [#allocation7]  }
  0x2d   :  { %v105_v27 = vor.u32 %v103_v10, %v101_v16  ;;  %953 = vmatprep.mubr.msk.bf16.mxu0 %vm139_vm1, %v311_v23  ;;  %961 = vmatprep.subr.bf16.mxu0 %v1052_v18  ;;  %v314_v30 = vrot.slane %v1232_v19, 1  ;;  %v119_v31 = vshrl.u32 %v1232_v19, 16  ;;  %v422_v40 = vrot.slane %v94_v8, 2  ;;  %s832_s15 = sshll.u32 %s1146_s14, 4  ;;  %s833_s15 = int_to_ptr.vmem [resolvable:$true] %s832_s15 }
  0x2e   :  { %v102_v34 = vsel %vm90_vm0, %v97_v26, %v101_v16  ;;  %v113_v36 = vor.u32 %v111_v28, %v109_v24  ;;  %v117_v37 = vrot.slane %v115_v29, 1  ;;  %937 = vmatprep.subr.bf16.mxu1 %v1054_v32  ;;  %v424_v42 = vrot.slane %v103_v10, 1  ;;  %v1062_v10 = vld [vmem:[#allocation5 + $0x18] sm:$0xff]   ;;  %s1111_s16 = scalar_lea.vmem %s833_s15, 32  ;;  %p1116_p3 = scmp.lt.s32.totalorder %s833_s15, %s833_s15 }
  0x2f   :  { %954 = vmatmul.mubr.msk.bf16.vlgmr.msra.gmra.mrb[0].mxu0 %vm139_vm1, %v313_v25  ;;  %v110_v35 = vsel %vm90_vm0, %v105_v27, %v109_v24  ;;  %929 = vmatprep.mubr.msk.bf16.mxu1 %vm139_vm1, %v102_v34  ;;  %v315_v38 = vsel %vm308_vm2, %v312_v14, %v314_v30  ;;  %vm420_vm3 = vsmask.f32 6400  ;;  %v423_v45 = vor.u32 %v422_v40, %v421_v17  ;;  %v1066_v14 = vld [vmem:[#allocation5 + $0x38] sm:$0xff]   ;;  %v876_v24 = vld [vmem:[%s1315_s2] ss:$0 sm:$0xff]  ;;  %p1112_p2 = scmp.ne.s32.totalorder %s833_s15, %s1111_s16  ;;  %p1117_p4 = scmp.lt.s32.totalorder %s1111_s16, %s1111_s16 }
  0x30   :  { %962 = vmatpush3.bf16.msra.mxu0 %v1052_v18  ;;  %930 = vmatmul.mubr.msk.bf16.vlgmr.msra.gmra.mrb[0].mxu1 %vm139_vm1, %v110_v35  ;;  %v118_v41 = vsel %vm90_vm0, %v113_v36, %v117_v37  ;;  %v121_v44 = vor.u32 %v119_v31, %v117_v37  ;;  %v429_v46 = vrot.slane %v107_v13, 2  ;;  %v428_v47 = vrot.slane %v111_v28, 1  ;;  %v1065_v13 = vld [vmem:[#allocation5 + $0x30] sm:$0xff]  }
  0x31   :  { %957 = vmatprep.mubr.msk.bf16.mxu0 %vm139_vm1, %v315_v38  ;;  %933 = vmatprep.mubr.msk.bf16.mxu1 %vm139_vm1, %v118_v41  ;;  %v317_v48 = vsel %vm308_vm2, %v314_v30, %v1234_v21  ;;  %v426_v49 = vor.u32 %v425_v22, %v424_v42  ;;  %v432_v50 = vrot.slane %v119_v31, 1  ;;  %v433_v51 = vrot.slane %v115_v29, 2  ;;  %v674_v36 = vld [vmem:[%s1316_s3] sm:$0xff]  ;;  %p1118_p5 = por %p1117_p4, %p1116_p3 }
  0x32   :  { %963 = vmatprep.subr.bf16.mxu0 %v1055_v33  ;;  %938 = vmatpush3.bf16.msra.mxu1 %v1054_v32  ;;  %v126_v53 = vsel %vm90_vm0, %v121_v44, %v1234_v21  ;;  %v430_v54 = vor.u32 %v429_v46, %v428_v47  ;;  %v439_v57 = vrot.slane %v1143_v20, 2  ;;  %v545_v61 = vrot.slane %v1209_v4, 2  ;;  %v676_v32 = vld [vmem:[%s1316_s3 + $0x10] sm:$0xff] }
  0x33   :  { %939 = vmatprep.subr.bf16.mxu1 %v1056_v39  ;;  %v427_v52 = vsel %vm420_vm3, %v423_v45, %v426_v49  ;;  %v434_v55 = vor.u32 %v433_v51, %v432_v50  ;;  %v546_v62 = vrot.slane %v1214_v5, 2  ;;  %vm544_vm4 = vcmask 1045504   ;;  %p1119_p6 = pnand %p1118_p5, %p1112_p2 }
  0x34   :  { %964 = vmatpush3.bf16.msra.mxu0 %v1055_v33  ;;  %v431_v56 = vsel %vm420_vm3, %v426_v49, %v430_v54  ;;  %v440_v60 = vor.u32 %v439_v57, %v1234_v21  ;;  %v548_v1 = vrot.slane %v1219_v6, 2  ;;  %v550_v2 = vrot.slane %v1232_v19, 2 }
  0x35   :  { %973 = vmatprep.subr.bf16.mxu0 %v1057_v43  ;;  %v435_v58 = vsel %vm420_vm3, %v430_v54, %v434_v55  ;;  %v547_v0 = vsel %vm544_vm4, %v545_v61, %v546_v62  ;;  %v1144_v8 = vmov 0.0   ;;  %vm1145_vm5 = vmmov 0  }
  0x36   :  { %940 = vmatpush3.bf16.msra.mxu1 %v1056_v39  ;;  %v441_v63 = vsel %vm420_vm3, %v434_v55, %v440_v60  ;;  %v549_v3 = vsel %vm544_vm4, %v546_v62, %v548_v1  ;;  %v677_v39 = vld [vmem:[%s1316_s3 + $0x18] sm:$0xff]  ;;  %vm733_vm6 = vcmask 1041409  }
  0x37   :  { %958 = vmatmul.mubr.msk.bf16.gmra.mrb[4].mxu0 %vm139_vm1, %v317_v48  ;;  %985 = vmatprep.subr.bf16.mxu1 %v1144_v8 }
  0x38   :  { %965 = vmatprep.mubr.msk.bf16.mxu0 %vm139_vm1, %v427_v52  ;;  %934 = vmatmul.mubr.msk.bf16.gmra.mrb[4].mxu1 %vm139_vm1, %v126_v53 }
  0x39   :  { %941 = vmatprep.mubr.msk.bf16.mxu1 %vm139_vm1, %v1209_v4  ;;  %v551_v4 = vsel %vm544_vm4, %v548_v1, %v550_v2 }
  0x3f   :  { %966 = vmatmul.mubr.msk.bf16.vlgmr.msra.gmra.mrb[0].mxu0 %vm139_vm1, %v431_v56 }
  0x40   :  { %974 = vmatpush3.bf16.msra.mxu0 %v1057_v43  ;;  %969 = vmatprep.mubr.msk.bf16.mxu0 %vm139_vm1, %v435_v58  ;;  %v675_v43 = vld [vmem:[%s1316_s3 + $0x8] sm:$0xff] }
  0x41   :  { %975 = vmatprep.subr.bf16.mxu0 %v1058_v59  ;;  %942 = vmatmul.mubr.msk.bf16.vlgmr.msra.gmra.mrb[0].mxu1 %vm139_vm1, %v1214_v5  ;;  %v553_v5 = vsel %vm544_vm4, %v550_v2, %v439_v57 }
  0x42   :  { %945 = vmatprep.mubr.msk.bf16.mxu1 %vm139_vm1, %v1219_v6  ;;  %986 = vmatpush3.bf16.msra.mxu1 %v1059_v7  ;;  %v1060_v6 = vld [vmem:[#allocation5 + $0x8] sm:$0xff]  }
  0x43   :  { %987 = vmatprep.subr.bf16.mxu1 %v1144_v8 }
  0x44   :  { %976 = vmatpush3.bf16.msra.mxu0 %v1058_v59 }
  0x46   :  { %988 = vmatpush3.bf16.msra.mxu1 %v1060_v6 }
  0x47   :  { %970 = vmatmul.mubr.msk.bf16.gmra.mrb[4].mxu0 %vm139_vm1, %v441_v63  ;;  %989 = vmatprep.subr.bf16.mxu1 %v1144_v8 }
  0x48   :  { %977 = vmatprep.mubr.msk.bf16.mxu0 %vm139_vm1, %v547_v0 }
  0x49   :  { %946 = vmatmul.mubr.msk.bf16.gmra.mrb[4].mxu1 %vm139_vm1, %v1232_v19 }
  0x4a   :  { %990 = vmatpush3.bf16.msra.mxu1 %v1061_v9  ;;  %1001 = vmatprep.mubr.msk.bf16.mxu1 %vm1145_vm5, %v1144_v8 }
  0x4b   :  { %991 = vmatprep.subr.bf16.mxu1 %v1144_v8 }
  0x4e   :  { %992 = vmatpush3.bf16.msra.mxu1 %v1062_v10 }
  0x4f   :  { %978 = vmatmul.mubr.msk.bf16.vlgmr.msra.gmra.mrb[0].mxu0 %vm139_vm1, %v549_v3  ;;  %993 = vmatprep.subr.bf16.mxu1 %v1144_v8 }
  0x50   :  { %981 = vmatprep.mubr.msk.bf16.mxu0 %vm139_vm1, %v551_v4 }
  0x52   :  { %994 = vmatpush3.bf16.msra.mxu1 %v1063_v11 }
  0x53   :  { %995 = vmatprep.subr.bf16.mxu1 %v1144_v8 }
  0x56   :  { %996 = vmatpush3.bf16.msra.mxu1 %v1064_v12 }
  0x57   :  { %982 = vmatmul.mubr.msk.bf16.gmra.mrb[4].mxu0 %vm139_vm1, %v553_v5  ;;  %997 = vmatprep.subr.bf16.mxu1 %v1144_v8 }
  0x5a   :  { %998 = vmatpush3.bf16.msra.mxu1 %v1065_v13 }
  0x5b   :  { %999 = vmatprep.subr.bf16.mxu1 %v1144_v8 }
  0x5e   :  { %1000 = vmatpush3.bf16.msra.mxu1 %v1066_v14 }
 0x114   :  { %v943_v15 = vpop.f32.mrb[0].mxu1 }
 0x115   :  { %v271_v16 = vpop.f32.mrb[1].mxu1 }
 0x116   :  { %v944_v17 = vpop.f32.mrb[2].mxu1 }
 0x117   :  { %v274_v18 = vpop.f32.mrb[3].mxu1 }
 0x11c   :  { %v947_v19 = vpop.f32.mrb[4].mxu1 }
 0x11d   :  { %v287_v20 = vpop.f32.mrb[5].mxu1 }
 0x11e   :  { %v948_v21 = vpop.f32.mrb[6].mxu1 }
 0x11f   :  { %v290_v22 = vpop.f32.mrb[7].mxu1 }
 0x122   :  { %v979_v23 = vpop.f32.mrb[0].mxu0 }
 0x123   :  { %v1005_v25 = vadd.f32 %v979_v23, %v943_v15  ;;  %v612_v26 = vpop.f32.mrb[1].mxu0 }
 0x124   :  { %v1006_v27 = vadd.f32 %v612_v26, %v271_v16  ;;  %v980_v28 = vpop.f32.mrb[2].mxu0 }
 0x125   :  { %v660_v29 = vadd.f32 %v1005_v25, %v876_v24  ;;  %v1007_v30 = vadd.f32 %v980_v28, %v944_v17  ;;  %v615_v31 = vpop.f32.mrb[3].mxu0  ;;  %v877_v28 = vld [vmem:[%s1318_s5] ss:$0 sm:$0xff] }
 0x126   :  { %v658_v33 = vadd.f32 %v1006_v27, %v876_v24  ;;  %v1008_v34 = vadd.f32 %v615_v31, %v274_v18 }
 0x127   :  { %v668_v35 = vmax.f32 %v660_v29, 0.0  ;;  %v661_v37 = vadd.f32 %v1007_v30, %v876_v24 }
 0x128   :  { %v666_v38 = vmax.f32 %v658_v33, 0.0  ;;  %v659_v40 = vadd.f32 %v1008_v34, %v876_v24 }
 0x129   :  { %v680_v41 = vmul.f32 %v676_v32, %v668_v35  ;;  %v669_v42 = vmax.f32 %v661_v37, 0.0 }
 0x12a   :  { %v678_v44 = vmul.f32 %v674_v36, %v666_v38  ;;  %v667_v45 = vmax.f32 %v659_v40, 0.0  ;;  %v983_v46 = vpop.f32.mrb[4].mxu0 }
 0x12b   :  { %v681_v47 = vmul.f32 %v677_v39, %v669_v42  ;;  %v1009_v48 = vadd.f32 %v983_v46, %v947_v19  ;;  %v628_v49 = vpop.f32.mrb[5].mxu0 }
 0x12c   :  { %v686_v50 = vmax.f32 %v678_v44, %v680_v41  ;;  %v679_v51 = vmul.f32 %v675_v43, %v667_v45  ;;  %v1010_v52 = vadd.f32 %v628_v49, %v287_v20  ;;  %v984_v53 = vpop.f32.mrb[6].mxu0 }
 0x12d   :  { %v664_v54 = vadd.f32 %v1009_v48, %v876_v24  ;;  %v1011_v55 = vadd.f32 %v984_v53, %v948_v21  ;;  %v631_v56 = vpop.f32.mrb[7].mxu0 }
 0x12e   :  { %v687_v57 = vmax.f32 %v679_v51, %v681_v47  ;;  %v662_v58 = vadd.f32 %v1010_v52, %v876_v24  ;;  %v1012_v59 = vadd.f32 %v631_v56, %v290_v22 }
 0x12f   :  { %v672_v60 = vmax.f32 %v664_v54, 0.0  ;;  %v665_v61 = vadd.f32 %v1011_v55, %v876_v24 }
 0x130   :  { %v688_v62 = vmax.f32 %v686_v50, %v687_v57  ;;  %v670_v63 = vmax.f32 %v662_v58, 0.0  ;;  %v663_v0 = vadd.f32 %v1012_v59, %v876_v24 }
 0x131   :  { %v684_v1 = vmul.f32 %v676_v32, %v672_v60  ;;  %v673_v2 = vmax.f32 %v665_v61, 0.0 }
 0x132   :  { %v689_v3 = vrot.slane %v688_v62, 4  ;;  %v682_v4 = vmul.f32 %v674_v36, %v670_v63  ;;  %v671_v5 = vmax.f32 %v663_v0, 0.0 }
 0x133   :  { %v685_v7 = vmul.f32 %v677_v39, %v673_v2 }
 0x134   :  { %v690_v8 = vmax.f32 %v688_v62, %v689_v3  ;;  %v695_v6 = vmax.f32 %v682_v4, %v684_v1  ;;  %v683_v9 = vmul.f32 %v675_v43, %v671_v5 }
 0x136   :  { %v691_v10 = vrot.slane %v690_v8, 2  ;;  %v696_v11 = vmax.f32 %v683_v9, %v685_v7 }
 0x138   :  { %v692_v12 = vmax.f32 %v690_v8, %v691_v10  ;;  %v697_v13 = vmax.f32 %v695_v6, %v696_v11 }
 0x13a   :  { %v698_v14 = vrot.slane %v697_v13, 4  ;;  %v693_v15 = vrot.slane %v692_v12, 1 }
 0x13c   :  { %v699_v16 = vmax.f32 %v697_v13, %v698_v14  ;;  %v694_v18 = vmax.f32 %v692_v12, %v693_v15 }
 0x13e   :  { %v700_v17 = vrot.slane %v699_v16, 2  ;;  %v704_v21 = vpack.c.bf16 %v694_v18, %v694_v18 }
 0x140   :  { %v701_v19 = vmax.f32 %v699_v16, %v700_v17  ;;  %v731_v24 = vunpack.c.l.b16 %v704_v21 }
 0x142   :  { %v702_v20 = vrot.slane %v701_v19, 1 }
 0x144   :  { %v703_v22 = vmax.f32 %v701_v19, %v702_v20 }
 0x146   :  { %v705_v23 = vpack.c.bf16 %v703_v22, %v703_v22 }
 0x148   :  { %v732_v25 = vunpack.c.l.b16 %v705_v23 }
 0x14a   :  { %v734_v26 = vsel %vm733_vm6, %v732_v25, %v731_v24 }
 0x14b   :  { %v735_v27 = vpack.c.b16 %v734_v26, %v734_v26 }
 0x14d   :  { %1002 = vmatmul.mubr.bf16.vlgmr.msra.gmra.mrb[8].mxu1 %v735_v27 }
 0x220   :  { %v819_v29 = vpop.f32.mrb[8].mxu1 }
 0x221   :  { %v820_v30 = vadd.f32 %v877_v28, %v819_v29  ;;  %v1003_v31 = vpop.f32.mrb[9].mxu1 }
 0x222   :  { %v822_v32 = vpop.f32.mrb[10].mxu1 }
 0x223   :  { %825 = vst [vmem:[#allocation7] sm:$0x3] %v820_v30  ;;  %v1004_v33 = vpop.f32.mrb[11].mxu1 }
 0x224   :  { %1122 = shalt.err (!%p1119_p6)
}
 0x225   :  { %s1123_s5 = scalar_lea.hbm %s1319_s6, 32 }
 0x226   :  { %p1124_p7 = scmp.ne.s32.totalorder %s1319_s6, %s1123_s5  ;;  %p1127_p8 = scmp.lt.u32.totalorder %s1123_s5, %s1319_s6 }
 0x228   :  { %p1129_p9 = pnand %p1127_p8, %p1124_p7 }
 0x22a   :  { %1132 = shalt.err (!%p1129_p9)
}
 0x22b   :  { %835 = dma.vmem_to_hbm [thread:$0]  %s833_s15, 32, %s1319_s6, [#allocation4]  }
 0x22c   :  { %1137 = dma.done.wait [#allocation4], 32  }
 0x22d   :  { %1138 = vsyncadd [#allocation4], 4294967264 }
 0x22e   :  { %839 = vsyncpa [#allocation3], 1 }
 0x22f   :  { %840 = vsyncpa [#allocation6], 1 }
 0x230   :  { %841 = vsyncpa [#allocation4], 1 }

</bundles_post_ra>
